<compile_context>
chip_gen: v5e
topology: v5e:2x2
jax: 0.10.0
libtpu: 0.0.40
codegen_flags: <defaults>
</compile_context>

<pallas_src>
import functools

import jax
import jax.numpy as jnp
from jax.experimental import pallas as pl
from jax.experimental.pallas import tpu as pltpu


def _round_up(v, m):
    return ((v + m - 1) // m) * m


def _patch_embed_kernel(x_ref, w_ref, b_ref, o_ref, *, acc_slab, mxu_dtype):
    """Computes one (tile_h, EB) output tile.

    x_ref: (C, tile_h, W)  activation row-tile, NCHW layout (batch squeezed)
    w_ref: (C, W, EB)      conv weight slab (pre-cast; resident across (b, h))
    b_ref: (1, EB)         bias, f32
    o_ref: (tile_h, EB)    output tile
    """
    c_dim = x_ref.shape[0]
    eb = o_ref.shape[-1]

    # Slab the embed dim so each f32 accumulator fits the vreg file (bounded
    # live range, a single store per slab, no per-channel VMEM round-trips).
    for e0 in range(0, eb, acc_slab):
        te = min(acc_slab, eb - e0)
        acc = None
        for c in range(c_dim):  # static unroll; accumulation stays in registers
            xc = x_ref[c].astype(mxu_dtype)              # (tile_h, W)
            wc = w_ref[c, :, e0:e0 + te]                 # (W, te)
            p = jnp.dot(xc, wc, preferred_element_type=jnp.float32)
            acc = p if acc is None else acc + p
        acc = acc + b_ref[:, e0:e0 + te]                 # bias already f32
        o_ref[:, e0:e0 + te] = acc.astype(o_ref.dtype)


def patch_embed_forward(x, weight, bias, *, use_bf16_mxu=True, min_grid_steps=8):
    """x: (B, C, H, W); weight: (E, C, 1, W); bias: (E,) -> (B, H, E)."""
    B, C, H, W = x.shape
    E = weight.shape[0]
    assert weight.shape == (E, C, 1, W)
    assert bias.shape == (E,)

    out_dtype = x.dtype
    mxu_dtype = jnp.bfloat16 if use_bf16_mxu else x.dtype

    # Tiny parameter-side layout plumbing (negligible HBM traffic).
    # (E, C, 1, W) -> (C, W, E); pre-cast so the resident weight is halved.
    w_cwe = jnp.transpose(weight[:, :, 0, :], (1, 2, 0)).astype(mxu_dtype)
    b2d = bias.astype(jnp.float32).reshape(1, E)

    x_item = jnp.dtype(x.dtype).itemsize
    o_item = jnp.dtype(out_dtype).itemsize
    w_item = jnp.dtype(mxu_dtype).itemsize

    # ---- generation-aware VMEM budget --------------------------------------
    try:
        cap = int(getattr(pltpu.get_tpu_info(), "vmem_capacity_bytes", 64 << 20))
    except Exception:  # be conservative (v7x per-core VMEM) if query fails
        cap = 64 << 20
    vmem_limit = int(max(min((3 * cap) // 4, 96 << 20), 32 << 20))
    budget = vmem_limit - (2 << 20)  # headroom for compiler-internal scratch

    # VMEM cost models: include (8,128) sublane/lane padding and the fact that
    # every BlockSpec operand is double-buffered (even constant-index ones).
    def weight_bytes(eb):
        w_buf = C * _round_up(W, 8) * _round_up(eb, 128) * w_item
        b_buf = 8 * _round_up(eb, 128) * 4
        return 2 * (w_buf + b_buf)

    def tile_bytes(th, eb):
        x_buf = C * _round_up(th, 8) * _round_up(W, 128) * x_item
        o_buf = _round_up(th, 8) * _round_up(eb, 128) * o_item
        return 2 * (x_buf + o_buf)

    # ---- choose resident embed-dim slab width EB ----------------------------
    # Fully resident when it fits comfortably; otherwise tile E with an extra
    # outermost grid axis (each weight slab DMA'd once; x re-read n_e times).
    eb_cands = [E] + sorted((d for d in range(128, E, 128) if E % d == 0),
                            reverse=True)
    EB = eb_cands[-1]
    for cand in eb_cands:
        if weight_bytes(cand) <= budget // 2:
            EB = cand
            break
    n_e = E // EB

    # ---- choose tile_h -------------------------------------------------------
    # Multiples of 8 satisfy the sublane rule (ragged tails are clamped by the
    # pipeline); H itself is always legal (full-dim escape hatch).  Prefer the
    # largest tile that still leaves >= min_grid_steps total steps.
    th_budget = budget - weight_bytes(EB)
    max_th = min(H, 512)
    th_cands = sorted({H} | set(range(8, max_th + 1, 8)), reverse=True)

    def n_steps(th):
        return n_e * B * (-(-H // th))

    tile_h = None
    tile_h_any = None
    for th in th_cands:
        if tile_bytes(th, EB) > th_budget:
            continue
        if tile_h_any is None:
            tile_h_any = th
        if n_steps(th) >= min_grid_steps:
            tile_h = th
            break
    if tile_h is None:
        tile_h = tile_h_any if tile_h_any is not None else min(th_cands)
    n_h = -(-H // tile_h)

    # ---- accumulator slab: keep (tile_h, acc_slab) f32 inside the vreg file --
    acc_slab = EB
    if EB > 128:
        for cand in (512, 384, 256, 128):
            if EB % cand == 0:
                acc_slab = cand
                if _round_up(tile_h, 8) * cand * 4 <= (96 << 10):
                    break

    grid = (n_e, B, n_h)
    kernel = functools.partial(_patch_embed_kernel,
                               acc_slab=acc_slab, mxu_dtype=mxu_dtype)

    out = pl.pallas_call(
        kernel,
        out_shape=jax.ShapeDtypeStruct((B, H, E), out_dtype),
        grid=grid,
        in_specs=[
            # x stays in NCHW; batch squeezed, tiled over H, full C and W.
            pl.BlockSpec((None, C, tile_h, W), lambda e, b, h: (b, 0, h, 0)),
            # Weight slab: constant across (b, h) -> DMA'd once per e block.
            pl.BlockSpec((C, W, EB), lambda e, b, h: (0, 0, e)),
            pl.BlockSpec((1, EB), lambda e, b, h: (0, e)),
        ],
        out_specs=pl.BlockSpec((None, tile_h, EB), lambda e, b, h: (b, h, e)),
        compiler_params=pltpu.CompilerParams(
            dimension_semantics=("arbitrary", "parallel", "parallel"),
            vmem_limit_bytes=vmem_limit,
        ),
    )(x, w_cwe, b2d)

    return out


if __name__ == "__main__":
    key = jax.random.PRNGKey(0)

    def run_case(B, C, H, W, E, case_key, **kwargs):
        kx, kw, kb = jax.random.split(case_key, 3)
        x = jax.random.normal(kx, (B, C, H, W), dtype=jnp.float32)
        # Synthetic Conv2d(C, E, kernel_size=[1, W], bias=True) parameters.
        weight = jax.random.normal(kw, (E, C, 1, W), dtype=jnp.float32) * 0.02
        bias = jax.random.normal(kb, (E,), dtype=jnp.float32) * 0.02

        out = patch_embed_forward(x, weight, bias, **kwargs)
        out = jax.block_until_ready(out)

        # Pure-JAX reference of the conv-as-matmul semantics (full f32).
        ref = jnp.einsum("bchw,ecw->bhe", x, weight[:, :, 0, :],
                         precision=jax.lax.Precision.HIGHEST) + bias
        assert out.shape == (B, H, E)
        assert out.dtype == x.dtype
        # bf16 MXU inputs with f32 accumulation -> loose-but-meaningful tol.
        assert jnp.allclose(out, ref, atol=3e-2, rtol=3e-2), (
            float(jnp.max(jnp.abs(out - ref))))

    k1, k2 = jax.random.split(key)
    # Small config consistent with the module's forward:
    # batch=2, in_chans=4, img_size=[16, 16], embed_dim=32.
    run_case(2, 4, 16, 16, 32, k1)
    # Exercises a multi-step grid, a ragged tail H tile and a lane-dense
    # (128-multiple) embed dim.
    run_case(1, 3, 20, 16, 256, k2, min_grid_steps=2)

    print("KERNEL_OK")
</pallas_src>

<mosaic_0001>
module attributes {stable_mosaic.version = 11 : i64} {
  func.func @_patch_embed_kernel(%arg0: i32, %arg1: i32, %arg2: i32, %arg3: memref<1x4x16x16xf32, #tpu.memory_space<vmem>>, %arg4: memref<4x16x32xbf16, #tpu.memory_space<vmem>>, %arg5: memref<1x32xf32, #tpu.memory_space<vmem>>, %arg6: memref<1x16x32xf32, #tpu.memory_space<vmem>>) attributes {dimension_semantics = [#tpu.dimension_semantics<arbitrary>, #tpu.dimension_semantics<parallel>, #tpu.dimension_semantics<parallel>], iteration_bounds = array<i64: 1, 2, 1>, scalar_prefetch = 0 : i64, scratch_operands = 0 : i64, tpu.core_type = #tpu.core_type<tc>, window_params = [{transform_indices = @transform_0, window_bounds = array<i64: 1, 4, 16, 16>}, {transform_indices = @transform_1, window_bounds = array<i64: 4, 16, 32>}, {transform_indices = @transform_2, window_bounds = array<i64: 1, 32>}, {transform_indices = @transform_3, window_bounds = array<i64: 1, 16, 32>}]} {
    %c0 = arith.constant 0 : index
    %c0_0 = arith.constant 0 : index
    %c0_1 = arith.constant 0 : index
    %c0_2 = arith.constant 0 : index
    %0 = vector.load %arg3[%c0, %c0_0, %c0_1, %c0_2] : memref<1x4x16x16xf32, #tpu.memory_space<vmem>>, vector<1x1x16x16xf32>
    %1 = vector.shape_cast %0 : vector<1x1x16x16xf32> to vector<16x16xf32>
    %2 = arith.truncf %1 : vector<16x16xf32> to vector<16x16xbf16>
    %c0_3 = arith.constant 0 : index
    %c0_4 = arith.constant 0 : index
    %c0_5 = arith.constant 0 : index
    %3 = vector.load %arg4[%c0_3, %c0_4, %c0_5] : memref<4x16x32xbf16, #tpu.memory_space<vmem>>, vector<1x16x32xbf16>
    %4 = vector.shape_cast %3 : vector<1x16x32xbf16> to vector<16x32xbf16>
    %cst = arith.constant dense<0.000000e+00> : vector<16x32xf32>
    %5 = tpu.matmul %2, %4, %cst {dimension_numbers = #tpu.dot_dimension_numbers<[1], [0], [0], [1], [0, 0, 1, 1], [], []>} : vector<16x16xbf16>, vector<16x32xbf16>, vector<16x32xf32> -> vector<16x32xf32>
    %c0_6 = arith.constant 0 : index
    %c1 = arith.constant 1 : index
    %c0_7 = arith.constant 0 : index
    %c0_8 = arith.constant 0 : index
    %6 = vector.load %arg3[%c0_6, %c1, %c0_7, %c0_8] : memref<1x4x16x16xf32, #tpu.memory_space<vmem>>, vector<1x1x16x16xf32>
    %7 = vector.shape_cast %6 : vector<1x1x16x16xf32> to vector<16x16xf32>
    %8 = arith.truncf %7 : vector<16x16xf32> to vector<16x16xbf16>
    %c1_9 = arith.constant 1 : index
    %c0_10 = arith.constant 0 : index
    %c0_11 = arith.constant 0 : index
    %9 = vector.load %arg4[%c1_9, %c0_10, %c0_11] : memref<4x16x32xbf16, #tpu.memory_space<vmem>>, vector<1x16x32xbf16>
    %10 = vector.shape_cast %9 : vector<1x16x32xbf16> to vector<16x32xbf16>
    %cst_12 = arith.constant dense<0.000000e+00> : vector<16x32xf32>
    %11 = tpu.matmul %8, %10, %cst_12 {dimension_numbers = #tpu.dot_dimension_numbers<[1], [0], [0], [1], [0, 0, 1, 1], [], []>} : vector<16x16xbf16>, vector<16x32xbf16>, vector<16x32xf32> -> vector<16x32xf32>
    %12 = arith.addf %5, %11 : vector<16x32xf32>
    %c0_13 = arith.constant 0 : index
    %c2 = arith.constant 2 : index
    %c0_14 = arith.constant 0 : index
    %c0_15 = arith.constant 0 : index
    %13 = vector.load %arg3[%c0_13, %c2, %c0_14, %c0_15] : memref<1x4x16x16xf32, #tpu.memory_space<vmem>>, vector<1x1x16x16xf32>
    %14 = vector.shape_cast %13 : vector<1x1x16x16xf32> to vector<16x16xf32>
    %15 = arith.truncf %14 : vector<16x16xf32> to vector<16x16xbf16>
    %c2_16 = arith.constant 2 : index
    %c0_17 = arith.constant 0 : index
    %c0_18 = arith.constant 0 : index
    %16 = vector.load %arg4[%c2_16, %c0_17, %c0_18] : memref<4x16x32xbf16, #tpu.memory_space<vmem>>, vector<1x16x32xbf16>
    %17 = vector.shape_cast %16 : vector<1x16x32xbf16> to vector<16x32xbf16>
    %cst_19 = arith.constant dense<0.000000e+00> : vector<16x32xf32>
    %18 = tpu.matmul %15, %17, %cst_19 {dimension_numbers = #tpu.dot_dimension_numbers<[1], [0], [0], [1], [0, 0, 1, 1], [], []>} : vector<16x16xbf16>, vector<16x32xbf16>, vector<16x32xf32> -> vector<16x32xf32>
    %19 = arith.addf %12, %18 : vector<16x32xf32>
    %c0_20 = arith.constant 0 : index
    %c3 = arith.constant 3 : index
    %c0_21 = arith.constant 0 : index
    %c0_22 = arith.constant 0 : index
    %20 = vector.load %arg3[%c0_20, %c3, %c0_21, %c0_22] : memref<1x4x16x16xf32, #tpu.memory_space<vmem>>, vector<1x1x16x16xf32>
    %21 = vector.shape_cast %20 : vector<1x1x16x16xf32> to vector<16x16xf32>
    %22 = arith.truncf %21 : vector<16x16xf32> to vector<16x16xbf16>
    %c3_23 = arith.constant 3 : index
    %c0_24 = arith.constant 0 : index
    %c0_25 = arith.constant 0 : index
    %23 = vector.load %arg4[%c3_23, %c0_24, %c0_25] : memref<4x16x32xbf16, #tpu.memory_space<vmem>>, vector<1x16x32xbf16>
    %24 = vector.shape_cast %23 : vector<1x16x32xbf16> to vector<16x32xbf16>
    %cst_26 = arith.constant dense<0.000000e+00> : vector<16x32xf32>
    %25 = tpu.matmul %22, %24, %cst_26 {dimension_numbers = #tpu.dot_dimension_numbers<[1], [0], [0], [1], [0, 0, 1, 1], [], []>} : vector<16x16xbf16>, vector<16x32xbf16>, vector<16x32xf32> -> vector<16x32xf32>
    %26 = arith.addf %19, %25 : vector<16x32xf32>
    %c0_27 = arith.constant 0 : index
    %c0_28 = arith.constant 0 : index
    %27 = vector.load %arg5[%c0_27, %c0_28] : memref<1x32xf32, #tpu.memory_space<vmem>>, vector<1x32xf32>
    %28 = vector.broadcast %27 : vector<1x32xf32> to vector<16x32xf32>
    %29 = arith.addf %26, %28 : vector<16x32xf32>
    %c0_29 = arith.constant 0 : index
    %c0_30 = arith.constant 0 : index
    %c0_31 = arith.constant 0 : index
    %30 = vector.load %arg6[%c0_29, %c0_30, %c0_31] : memref<1x16x32xf32, #tpu.memory_space<vmem>>, vector<1x16x32xf32>
    %31 = vector.shape_cast %30 : vector<1x16x32xf32> to vector<16x32xf32>
    %32 = vector.shape_cast %29 : vector<16x32xf32> to vector<1x16x32xf32>
    tpu.vector_store %arg6[%c0_29, %c0_30, %c0_31], %32 {strides = array<i32>} : memref<1x16x32xf32, #tpu.memory_space<vmem>>, vector<1x16x32xf32>,
    return
  }
  func.func @transform_0(%arg0: i32, %arg1: i32, %arg2: i32) -> (i32, i32, i32, i32) {
    %c0_i32 = arith.constant 0 : i32
    %c0_i32_0 = arith.constant 0 : i32
    %c0_i32_1 = arith.constant 0 : i32
    return %arg1, %c0_i32, %arg2, %c0_i32_0 : i32, i32, i32, i32
  }
  func.func @transform_1(%arg0: i32, %arg1: i32, %arg2: i32) -> (i32, i32, i32) {
    %c0_i32 = arith.constant 0 : i32
    %c0_i32_0 = arith.constant 0 : i32
    %c0_i32_1 = arith.constant 0 : i32
    return %c0_i32, %c0_i32_0, %arg0 : i32, i32, i32
  }
  func.func @transform_2(%arg0: i32, %arg1: i32, %arg2: i32) -> (i32, i32) {
    %c0_i32 = arith.constant 0 : i32
    %c0_i32_0 = arith.constant 0 : i32
    return %c0_i32, %arg0 : i32, i32
  }
  func.func @transform_3(%arg0: i32, %arg1: i32, %arg2: i32) -> (i32, i32, i32) {
    %c0_i32 = arith.constant 0 : i32
    return %arg1, %arg2, %arg0 : i32, i32, i32
  }
}

</mosaic_0001>

<bundles_post_ra>
// kernel: tpu_custom_call.1
= control target key start
LH: loop header
LB: loop body
LE: loop exit
PB: predicated region body
PF: predicated region fallthrough
CT: control target
= control target key end

     0   :  { %s985_s0 = inlined_call_operand.hbm [shape: f32[2,4,16,16], index: 0, kind: input, shape index: {}]   ;;  %s986_s1 = inlined_call_operand.hbm [shape: bf16[4,16,32], index: 1, kind: input, shape index: {}]   ;;  %s987_s2 = inlined_call_operand.vmem [shape: f32[1,32], index: 2, kind: input, shape index: {}]   ;;  %s988_s3 = inlined_call_operand.hbm [shape: f32[2,16,32], index: 3, kind: output, shape index: {}]  }
   0x1   :  { %989 = sst [smem:[#allocation11_spill]] %s986_s1 }
   0x2   :  { %8 = vsyncpa [#allocation3], 0 }
   0x3   :  { %10 = vsyncpa [#allocation3 + $0x1], 0 }
   0x4   :  { %11 = vsyncpa [#allocation6], 0 }
   0x5   :  { %12 = vsyncpa [#allocation4], 0 }
   0x6   :  { %14 = vsyncpa [#allocation4 + $0x1], 0  ;;  %s830_s12 = smov 0   ;;  %s832_s13 = smov 0  }
   0x7   :  { %s834_s14 = smov 0   ;;  %s836_s15 = smov 0  }
   0x8   :  { %s838_s16 = smov 0   ;;  %s840_s17 = smov 0  }
   0x9 LB: > { %s525_s18 = sadd.s32 4294967295, %s801_s17   ;;  %s526_s19 = sadd.s32 4294967294, %s801_s17   ;;  %s801_s17 = sphi %s840_s17, %s20_s17   ;;  %s797_s16 = sphi %s838_s16, %s1002_s16   ;;  %s793_s15 = sphi %s836_s15, %s1001_s15   ;;  %s789_s14 = sphi %s834_s14, %s1000_s14   ;;  %s785_s13 = sphi %s832_s13, %s999_s13   ;;  %s781_s12 = sphi %s830_s12, %s998_s12  }
   0xa   : > { %p61_p0 = scmp.ne.s32.totalorder %s785_s13, %s781_s12  ;;  %p864_p1 = scmp.eq.s32.totalorder %s525_s18, 0 }
   0xb   : > { %p868_p2 = scmp.eq.s32.totalorder %s525_s18, 1  ;;  %p147_p3 = scmp.eq.s32.totalorder %s526_s19, 1 }
   0xc   : > { %p874_p4 = por %p864_p1, %p61_p0  ;;  %p527_p5 = scmp.ge.s32.totalorder %s801_s17, 1 }
   0xd   : > { %p879_p6 = por %p147_p3, %p61_p0  ;;  %p154_p7 = scmp.lt.s32.totalorder %s801_s17, 3 }
   0xe   : > { %s994_s1 = sld [smem:[#allocation11_spill]]  ;;  %s803_s28 = smov [#allocation5]  }
   0xf   : > { %p887_p8 = pnand %p527_p5, %p154_p7  ;;  %s169_s29 = sshll.u32 %s803_s28, 4  ;;  %s170_s29 = int_to_ptr.vmem [resolvable:$true] %s169_s29 }
  0x10   : > { %p530_p11 = scmp.ge.s32.totalorder %s801_s17, 2  ;;  %s804_s30 = smov 64  }
  0x11   : > { %p583_p9 = pneg %p887_p8  ;;  %s805_s4 = smov 4  }
  0x12   : > { %s35_s5 = sadd.s32 1, %s797_s16  ;;  %s48_s6 = sadd.s32 1, %s789_s14 }
  0x13   : > { %p584_p10 = pnand %p583_p9, %p864_p1  ;;  %p37_p12 = scmp.ge.s32.totalorder %s35_s5, 2 }
  0x14   : > { %s167_s26 = sshll.u32 %s994_s1, 4  ;;  %p55_p13 = scmp.ne.s32.totalorder %s789_s14, %s785_s13  ;;  %s168_s26 = int_to_ptr.hbm [resolvable:$true] %s167_s26 }
  0x15   : > { %586 = dma.hbm_to_vmem [thread:$0]  (!%p584_p10), %s168_s26, 512, %s170_s29, [#allocation6], %s804_s30, %s804_s30, %s805_s4  }
  0x16   : > { %p56_p0 = scmp.eq.s32.totalorder %s801_s17, 0  ;;  %s1004_s5 = smov (%p37_p12, %s35_s5), 0 }
  0x17   : > { %p909_p5 = por %p868_p2, %p55_p13  ;;  %s43_s9 = ssub.s32 %s797_s16, %s1004_s5 }
  0x18   : > { %p903_p3 = por %p56_p0, %p55_p13  ;;  %p596_p7 = scmp.lt.s32.totalorder %s801_s17, 2 }
  0x19   : > { %p46_p9 = scmp.eq.s32.totalorder %s43_s9, 0  ;;  %s189_s10 = sand.u32 1, %s789_s14  }
  0x1a   : > { %s531_s11 = sshll.u32 %s189_s10, 6  ;;  %s569_s19 = sshll.u32 %s797_s16, 6 }
  0x1b   : > { %s918_s18 = scalar_select %p46_p9, %s789_s14, %s48_s6  }
  0x1c   : > { %s200_s26 = scalar_lea.hbm %s985_s0, %s569_s19  ;;  %s193_s28 = scalar_lea.vmem [#allocation2], %s531_s11 }
  0x1d   : > { %s203_s29 = sshll.u32 %s193_s28, 4  ;;  %s201_s21 = sshll.u32 %s200_s26, 4  ;;  %s204_s29 = int_to_ptr.vmem [resolvable:$true] %s203_s29  ;;  %s202_s21 = int_to_ptr.hbm [resolvable:$true] %s201_s21 }
  0x1e   : > { %p588_p2 = pnand %p596_p7, %p903_p3  ;;  %s190_s30 = scalar_lea.sflag [#allocation3], %s189_s10 }
  0x1f   : > { %s806_s4 = smov 128   ;;  %s807_s1 = smov 8  }
  0x20   : > { %590 = dma.hbm_to_vmem [thread:$0]  (!%p588_p2), %s202_s21, 1024, %s204_s29, %s190_s30, %s806_s4, %s806_s4, %s807_s1  }
  0x21   : > { %215 = sbr.rel (%p887_p8) target bundleno = 197 (0xc5), region = 32  ;;  %s929_s6 = sand.u32 (!%p887_p8), 1, %s785_s13  }
  0x22   : > { %s535_s9 = sshll.u32 (!%p887_p8), %s929_s6, 6  ;;  %s218_s11 = scalar_lea.sflag (!%p887_p8), [#allocation3], %s929_s6 }
  0x23   : > { %s221_s19 = scalar_lea.vmem (!%p887_p8), [#allocation2], %s535_s9 }
  0x26   : > { %768 = dma.done.wait (%p874_p4), %s218_s11, 1024  }
  0x27   : > { %770 = vsyncadd (%p874_p4), %s218_s11, 4294966272 }
  0x28   : > { %772 = dma.done.wait (%p864_p1), [#allocation6], 512  }
  0x29   : > { %774 = vsyncadd (%p864_p1), [#allocation6], 4294966784  ;;  %v571_v0 = vld [vmem:[#allocation5 + $0x8] sm:$0xff]  ;;  %v570_v1 = vld [vmem:[#allocation5] sm:$0xff]  ;;  %vm277_vm0 = vcmask 130048   ;;  %s537_s1 = sshll.u32 %s929_s6, 4 }
  0x2a   : > { %v572_v2 = vld [vmem:[#allocation5 + $0x10] sm:$0xff]  ;;  %v573_v3 = vld [vmem:[#allocation5 + $0x18] sm:$0xff]  ;;  %288 = vmatpush.bf16.msra.mxu0 %v571_v0  ;;  %311 = vmatpush.bf16.msra.mxu1 %v570_v1  ;;  %v259_v7 = vld [vmem:[%s221_s19] sm:$0xff]  ;;  %s574_s27 = sshll.u32 %s793_s15, 4  ;;  %vm388_vm1 = vcmask 261120   ;;  %s252_s25 = scalar_lea.vmem [#allocation7], %s537_s1 }
  0x2b   : > { %v538_v4 = vld [vmem:[%s221_s19 + $0x10] sm:$0xff]  ;;  %v539_v5 = vld [vmem:[%s221_s19 + $0x18] sm:$0xff]  ;;  %v260_v8 = vld [vmem:[%s221_s19 + $0x8] sm:$0xff]  ;;  %341 = vmatpush.bf16.msra.mxu2 %v572_v2  ;;  %373 = vmatpush.bf16.msra.mxu3 %v573_v3  ;;  %s406_s24 = scalar_lea.hbm %s988_s3, %s574_s27  ;;  %s407_s26 = sshll.u32 %s252_s25, 4  ;;  %s408_s26 = int_to_ptr.vmem [resolvable:$true] %s407_s26 }
  0x2c   : > { %v267_v6 = vpack.c.bf16 %v539_v5, %v538_v4  ;;  %v550_v9 = vld [vmem:[%s221_s19 + $0x20] sm:$0xff]  ;;  %v261_v10 = vpack.c.bf16 %v260_v8, %v259_v7  ;;  %v551_v11 = vld [vmem:[%s221_s19 + $0x28] sm:$0xff]  ;;  %v557_v12 = vld [vmem:[%s221_s19 + $0x30] sm:$0xff]  ;;  %s409_s28 = sshll.u32 %s406_s24, 4  ;;  %s392_s15 = scalar_lea.sflag [#allocation4], %s929_s6  ;;  %s410_s28 = int_to_ptr.hbm [resolvable:$true] %s409_s28 }
  0x2d   : > { %v558_v13 = vld [vmem:[%s221_s19 + $0x38] sm:$0xff]  ;;  %v321_v14 = vpack.c.bf16 %v551_v11, %v550_v9  ;;  %v654_v22 = vld [vmem:[%s987_s2] ss:$0 sm:$0xff]  ;;  %s729_s29 = sshra.s32 %s410_s28, 4  ;;  %s735_s9 = scalar_lea.hbm %s988_s3, 32  ;;  %s730_s29 = int_to_ptr.hbm [resolvable:$true] %s729_s29 }
  0x2e   : > { %v353_v15 = vpack.c.bf16 %v558_v13, %v557_v12  ;;  %544 = vmatmul.msk.bf16.vlgmr.msra.gmra.mxu0 %vm277_vm0, %v267_v6  ;;  %549 = vmatmul.msk.bf16.vlgmr.msra.gmra.mxu1 %vm277_vm0, %v261_v10  ;;  %s731_s21 = scalar_lea.hbm %s730_s29, 16  ;;  %p736_p10 = scmp.lt.s32.totalorder %s730_s29, %s988_s3 }
  0x2f   : > { %556 = vmatmul.msk.bf16.vlgmr.msra.gmra.mxu2 %vm277_vm0, %v321_v14  ;;  %p732_p1 = scmp.ne.s32.totalorder %s730_s29, %s731_s21  ;;  %p737_p12 = scmp.lt.s32.totalorder %s735_s9, %s731_s21 }
  0x30   : > { %563 = vmatmul.msk.bf16.vlgmr.msra.gmra.mxu3 %vm277_vm0, %v353_v15 }
  0x31   : > { %p733_p4 = pnand %p732_p1, %p909_p5  ;;  %p738_p13 = por %p737_p12, %p736_p10 }
  0x33   : > { %p734_p8 = pneg %p733_p4 }
  0x35   : > { %p739_p0 = pnand %p738_p13, %p734_p8 }
  0xab   : > { %v290_v16 = vpop.f32.mrf.mxu0  ;;  %v313_v17 = vpop.f32.mrf.mxu1 }
  0xac   : > { %v314_v18 = vadd.f32 %v313_v17, %v290_v16 }
  0xb2   : > { %v343_v19 = vpop.f32.mrf.mxu2 }
  0xb3   : > { %v375_v20 = vpop.f32.mrf.mxu3  ;;  %v348_v21 = vadd.f32 %v343_v19, %v314_v18  ;;  %v292_v24 = vpop.f32.mrf.mxu0 }
  0xb4   : > { %v315_v25 = vpop.f32.mrf.mxu1 }
  0xb5   : > { %v380_v23 = vadd.f32 %v375_v20, %v348_v21  ;;  %v316_v27 = vadd.f32 %v315_v25, %v292_v24 }
  0xb7   : > { %v386_v26 = vadd.f32 %v654_v22, %v380_v23 }
  0xb9   : > { %389 = vst.msk [vmem:[%s252_s25] sm:$0xff] %vm388_vm1, %v386_v26 }
  0xba   : > { %v345_v28 = vpop.f32.mrf.mxu2 }
  0xbb   : > { %v349_v29 = vadd.f32 %v345_v28, %v316_v27  ;;  %v377_v30 = vpop.f32.mrf.mxu3 }
  0xbd   : > { %v381_v31 = vadd.f32 %v377_v30, %v349_v29 }
  0xbf   : > { %v387_v32 = vadd.f32 %v654_v22, %v381_v31 }
  0xc1   : > { %390 = vst.msk [vmem:[%s252_s25 + $0x8] sm:$0xff] %vm388_vm1, %v387_v32 }
  0xc2   : > { %742 = shalt.err (!%p739_p0)
}
  0xc3   : > { %s808_s6 = smov 128   ;;  %s809_s1 = smov 8  }
  0xc4   : > { %581 = dma.vmem_to_hbm [thread:$0]  (%p909_p5), %s408_s26, 256, %s410_s28, %s392_s15, %s808_s6, %s808_s6, %s809_s1  }
  0xc5 PF: > { %s424_s20 = sand.u32 1, %s781_s12   ;;  %p592_p3 = pnand %p530_p11, %p879_p6 }
  0xc6   : > { %s425_s22 = scalar_lea.sflag [#allocation4], %s424_s20 }
  0xc7   : > { %p593_p7 = pneg %p592_p3 }
  0xc9   : > { %776 = dma.done.wait (%p593_p7), %s425_s22, 256  }
  0xca   : > { %778 = vsyncadd (%p593_p7), %s425_s22, 4294967040  ;;  %s20_s17 = sadd.s32 1, %s801_s17   ;;  %s998_s12 = smov %s785_s13 }
  0xcb   : > { %p17_p9 = scmp.ge.s32.totalorder %s20_s17, 4   ;;  %s999_s13 = smov %s789_s14 }
  0xcc   : > { %s1000_s14 = smov %s918_s18  ;;  %s1001_s15 = smov %s797_s16 }
  0xcd   : > { %s1002_s16 = smov %s1004_s5  ;;  %19 = sbr.rel (!%p17_p9) target bundleno = 9 (0x9), region = 91 }
  0xd2   :  { %431 = vsyncpa [#allocation3], 1 }
  0xd3   :  { %433 = vsyncpa [#allocation3 + $0x1], 1 }
  0xd4   :  { %434 = vsyncpa [#allocation6], 1 }
  0xd5   :  { %435 = vsyncpa [#allocation4], 1 }
  0xd6   :  { %437 = vsyncpa [#allocation4 + $0x1], 1 }

</bundles_post_ra>
